<compile_context>
chip_gen: v7x
topology: tpu7x:2x2x1
jax: 0.10.0
libtpu: 0.0.40
codegen_flags: <defaults>
</compile_context>

<pallas_src>
import jax
import jax.numpy as jnp
from jax.experimental import pallas as pl
from jax.experimental.pallas import tpu as pltpu


def _round_up(x, m):
    return (x + m - 1) // m * m


def _vmem_capacity_bytes():
    try:
        return int(pltpu.get_tpu_info().vmem_capacity_bytes)
    except Exception:
        return 64 * 1024 * 1024  # conservative fallback (v7x per-TC VMEM)


def _tensorcores_per_chip():
    try:
        kind = jax.devices()[0].device_kind.lower()
    except Exception:
        return 1
    # v4 / v5p megacore and v7x have 2 TensorCores per chip; v5e / v6e have 1.
    if ("v4" in kind) or ("v5p" in kind) or ("v5 p" in kind) or ("7" in kind):
        return 2
    return 1


# --------------------------------------------------------------------------- #
# Kernel                                                                      #
# --------------------------------------------------------------------------- #
def _make_gcn_kernel(tk, resident_embeds):
    """grid = (N//tm, D//tn, K//tk); reduction axis k is LAST / 'arbitrary'."""

    def kernel(mask_ref, emb_ref, scale_ref, out_ref, acc_ref):
        k = pl.program_id(2)

        if resident_embeds:
            # Full bf16 embeds panel lives in VMEM; slice the k-th chunk.
            off = pl.multiple_of(k * tk, tk)
            emb = emb_ref[pl.ds(off, tk), :]
        else:
            emb = emb_ref[...]

        # int8 0/1 mask -> bf16 on the VPU (free in the mem-bound regime),
        # bf16 x bf16 on the MXU with f32 accumulation.
        prod = jnp.dot(mask_ref[...].astype(jnp.bfloat16), emb,
                       preferred_element_type=jnp.float32)

        @pl.when(k == 0)
        def _():
            acc_ref[...] = prod          # first partial: no zero-init store

        @pl.when(k > 0)
        def _():
            acc_ref[...] += prod

        @pl.when(k == pl.num_programs(2) - 1)
        def _():
            # Epilogue: exact per-row 1/deg scale in f32, cast to out dtype.
            out_ref[...] = (acc_ref[...] * scale_ref[...]).astype(out_ref.dtype)

    return kernel


# --------------------------------------------------------------------------- #
# Per-graph preparation (hoisted out of the per-layer call)                    #
# --------------------------------------------------------------------------- #
def prepare_gcn_graph(adj_mask, *, symmetric=False, tm=None, tk=None):
    """Precompute (once per graph) the padded int8 adjacency and 1/deg scale.

    adj_mask : [N, K] 0/1 adjacency with self loops (any float/int dtype).
    Returns a dict reusable across every gcn_spmm call on this graph.
    """
    N, K = adj_mask.shape
    budget = int(0.55 * _vmem_capacity_bytes())
    n_cores = _tensorcores_per_chip()

    n128 = _round_up(N, 128)
    k128 = _round_up(K, 128)

    if tk is None:
        tk = min(512, k128)

    if tm is None:
        # Grow tm to cut the embeds re-read stream and per-step grid overhead.
        # Conservative working-set check assumes a 512-lane f32 acc/out tile.
        tm = 128
        for cand in (2048, 1024, 512, 256, 128):
            if cand > n128:
                continue
            ws = (2 * cand * tk            # int8 mask tile (double-buffered)
                  + 2 * tk * 512 * 2       # bf16 embeds tile
                  + cand * 512 * 4         # f32 accumulator scratch
                  + 2 * cand * 512 * 4     # output tile (worst-case f32)
                  + 2 * cand * 128 * 4)    # 1/deg column (lane-padded)
            if ws <= budget:
                tm = cand
                break
        # Only chips with 2 TensorCores benefit from forcing >= 2 programs on
        # the parallel i axis; on single-TC v5e/v6e it just doubles re-reads.
        if n_cores >= 2 and n128 // tm < 2 and n128 >= 256:
            tm = max(128, (n128 // 2) // 128 * 128)

    n_pad = _round_up(N, tm)
    k_pad = _round_up(K, tk)

    deg = jnp.maximum(jnp.sum(adj_mask.astype(jnp.float32), axis=1), 1.0)
    if symmetric:
        assert N == K, "symmetric normalization requires a square adjacency"
        row_scale = jax.lax.rsqrt(deg)
        col_scale = row_scale            # assumes A == A.T
    else:
        row_scale = 1.0 / deg
        col_scale = None

    mask_i8 = jnp.pad(adj_mask.astype(jnp.int8),
                      ((0, n_pad - N), (0, k_pad - K)))
    scale_p = jnp.pad(row_scale.astype(jnp.float32).reshape(N, 1),
                      ((0, n_pad - N), (0, 0)))

    return dict(mask=mask_i8, row_scale=scale_p, col_scale=col_scale,
                n=N, k=K, tm=tm, tk=tk, n_pad=n_pad, k_pad=k_pad,
                vmem_budget=budget)


# --------------------------------------------------------------------------- #
# spmm wrapper                                                                 #
# --------------------------------------------------------------------------- #
def gcn_spmm(graph, embeds, *, emb_dtype=jnp.bfloat16, out_dtype=None):
    """Computes diag(row_scale) @ adj_mask @ embeds with f32 MXU accumulation.

    graph  : dict from prepare_gcn_graph (padded int8 mask + 1/deg, in HBM).
    embeds : [K, D] node embeddings.
    Mathematically identical to torch.spmm(row-normalized adj, embeds), with
    embeddings rounded to bf16 before the MXU (set emb_dtype=jnp.float32 for
    an exact fallback).
    """
    K, D = embeds.shape
    assert K == graph["k"], "embeds rows must match adjacency columns"
    N = graph["n"]
    tm, tk = graph["tm"], graph["tk"]
    n_pad, k_pad = graph["n_pad"], graph["k_pad"]
    budget = graph["vmem_budget"]

    out_dtype = embeds.dtype if out_dtype is None else out_dtype
    out_size = jnp.dtype(out_dtype).itemsize
    emb_size = jnp.dtype(emb_dtype).itemsize

    if graph["col_scale"] is not None:
        embeds = embeds * graph["col_scale"][:, None]

    d128 = _round_up(D, 128)

    def ws(tn, resident):
        emb_bytes = 2 * (k_pad * tn if resident else tk * tn) * emb_size
        return (2 * tm * tk                 # int8 mask (double-buffered)
                + emb_bytes                 # embeds
                + tm * tn * 4               # f32 accumulator scratch
                + 2 * tm * tn * out_size    # output tile
                + 2 * tm * 128 * 4)         # 1/deg column (lane-padded)

    # tn = full embedding width whenever the tile fits -> the adjacency (the
    # dominant HBM stream) is read exactly once per forward.
    tn = d128
    if ws(tn, False) > budget:
        for cand in (512, 256, 128):
            tn = cand
            if ws(tn, False) <= budget:
                break
    d_pad = _round_up(D, tn)

    # Keep the whole bf16 embeds panel VMEM-resident when it fits the
    # generation-aware budget (removes the (n_pad/tm)x embeds re-read).
    resident = (tn == d_pad) and (ws(tn, True) <= budget)

    emb_p = jnp.pad(embeds.astype(emb_dtype), ((0, k_pad - K), (0, d_pad - D)))

    grid = (n_pad // tm, d_pad // tn, k_pad // tk)

    if resident:
        emb_spec = pl.BlockSpec((k_pad, tn), lambda i, j, k: (0, j))
    else:
        emb_spec = pl.BlockSpec((tk, tn), lambda i, j, k: (k, j))

    vmem_limit = int(min(max(int(1.5 * ws(tn, resident)), 16 * 1024 * 1024),
                         budget))

    kernel = _make_gcn_kernel(tk, resident)

    out = pl.pallas_call(
        kernel,
        out_shape=jax.ShapeDtypeStruct((n_pad, d_pad), out_dtype),
        grid_spec=pltpu.PrefetchScalarGridSpec(
            num_scalar_prefetch=0,
            grid=grid,
            in_specs=[
                pl.BlockSpec((tm, tk), lambda i, j, k: (i, k)),   # int8 mask
                emb_spec,                                         # embeds
                pl.BlockSpec((tm, 1), lambda i, j, k: (i, 0)),    # 1/deg col
            ],
            out_specs=pl.BlockSpec((tm, tn), lambda i, j, k: (i, j)),
            scratch_shapes=[pltpu.VMEM((tm, tn), jnp.float32)],
        ),
        # NOTE: accumulation across k is only correct because k is the LAST
        # grid axis with "arbitrary" semantics; do not reorder the grid.
        compiler_params=pltpu.CompilerParams(
            dimension_semantics=("parallel", "parallel", "arbitrary"),
            vmem_limit_bytes=vmem_limit,
        ),
    )(graph["mask"], emb_p, graph["row_scale"])

    return out[:N, :D]


def gcn_layer(adj_mask, embeds, *, symmetric=False, **kw):
    """GCNLayer.forward equivalent: normalized-adjacency propagation.

    For repeated layers on the same graph, call prepare_gcn_graph() once and
    reuse it with gcn_spmm() (this convenience wrapper re-prepares).
    """
    graph = prepare_gcn_graph(adj_mask, symmetric=symmetric)
    return gcn_spmm(graph, embeds, **kw)


if __name__ == "__main__":
    key = jax.random.PRNGKey(0)
    k_adj, k_emb = jax.random.split(key)

    N = 256   # number of graph nodes
    D = 128   # embedding dim

    # Deterministic sparse-ish 0/1 adjacency with self loops.
    raw = jax.random.uniform(k_adj, (N, N), dtype=jnp.float32)
    mask = (raw > 0.9).astype(jnp.float32)                 # ~10% edge density
    adj_mask = jnp.clip(mask + jnp.eye(N, dtype=jnp.float32), 0.0, 1.0)

    embeds = jax.random.normal(k_emb, (N, D), dtype=jnp.float32)

    # Per-graph prep once; reuse across both propagation layers (the VGAE
    # encoder runs several GCN layers on the same adjacency per forward).
    graph = prepare_gcn_graph(adj_mask)

    h1 = gcn_spmm(graph, embeds)
    h2 = gcn_spmm(graph, h1)
    h2 = jax.block_until_ready(h2)

    # Reference: plain f32 row-normalized spmm (== torch.spmm(adj_norm, x)).
    deg = jnp.sum(adj_mask, axis=1, keepdims=True)
    adj_norm = adj_mask / deg
    ref1 = adj_norm @ embeds
    ref2 = adj_norm @ ref1

    assert h1.shape == (N, D) and h2.shape == (N, D)
    # bf16 embeds on the MXU (f32 accumulation) -> ~1e-3 relative error.
    assert jnp.allclose(h1, ref1, atol=2e-2, rtol=2e-2)
    assert jnp.allclose(h2, ref2, atol=3e-2, rtol=3e-2)

    print("KERNEL_OK")
</pallas_src>

<mosaic_0001>
module attributes {stable_mosaic.version = 11 : i64} {
  func.func @kernel(%arg0: i32, %arg1: i32, %arg2: i32, %arg3: memref<256x256xi8, #tpu.memory_space<vmem>>, %arg4: memref<256x128xbf16, #tpu.memory_space<vmem>>, %arg5: memref<256x1xf32, #tpu.memory_space<vmem>>, %arg6: memref<256x128xf32, #tpu.memory_space<vmem>>, %arg7: memref<256x128xf32, #tpu.memory_space<vmem>>) attributes {dimension_semantics = [#tpu.dimension_semantics<parallel>, #tpu.dimension_semantics<parallel>, #tpu.dimension_semantics<arbitrary>], iteration_bounds = array<i64: 1, 1, 1>, scalar_prefetch = 0 : i64, scratch_operands = 1 : i64, tpu.core_type = #tpu.core_type<tc>, window_params = [{transform_indices = @transform_0, window_bounds = array<i64: 256, 256>}, {transform_indices = @transform_1, window_bounds = array<i64: 256, 128>}, {transform_indices = @transform_2, window_bounds = array<i64: 256, 1>}, {transform_indices = @transform_3, window_bounds = array<i64: 256, 128>}]} {
    %c256_i32 = arith.constant 256 : i32
    %0 = arith.muli %arg2, %c256_i32 : i32
    %1 = tpu.assume_multiple %0, 256 : i32
    %2 = arith.index_cast %1 : i32 to index
    %c0 = arith.constant 0 : index
    %3 = vector.load %arg4[%2, %c0] : memref<256x128xbf16, #tpu.memory_space<vmem>>, vector<256x128xbf16>
    %c0_0 = arith.constant 0 : index
    %c0_1 = arith.constant 0 : index
    %4 = vector.load %arg3[%c0_0, %c0_1] : memref<256x256xi8, #tpu.memory_space<vmem>>, vector<256x256xi8>
    %5 = arith.sitofp %4 : vector<256x256xi8> to vector<256x256xbf16>
    %cst = arith.constant dense<0.000000e+00> : vector<256x128xf32>
    %6 = tpu.matmul %5, %3, %cst {dimension_numbers = #tpu.dot_dimension_numbers<[1], [0], [0], [1], [0, 0, 1, 1], [], []>} : vector<256x256xbf16>, vector<256x128xbf16>, vector<256x128xf32> -> vector<256x128xf32>
    %c0_i32 = arith.constant 0 : i32
    %7 = arith.cmpi eq, %arg2, %c0_i32 : i32
    %8 = arith.extui %7 : i1 to i32
    %c0_i32_2 = arith.constant 0 : i32
    %9 = arith.cmpi ne, %8, %c0_i32_2 : i32
    scf.if %9 {
      %c0_7 = arith.constant 0 : index
      %c0_8 = arith.constant 0 : index
      %16 = vector.load %arg7[%c0_7, %c0_8] : memref<256x128xf32, #tpu.memory_space<vmem>>, vector<256x128xf32>
      tpu.vector_store %arg7[%c0_7, %c0_8], %6 {strides = array<i32>} : memref<256x128xf32, #tpu.memory_space<vmem>>, vector<256x128xf32>,
    } else {
    }
    %c0_i32_3 = arith.constant 0 : i32
    %10 = arith.cmpi sgt, %arg2, %c0_i32_3 : i32
    %11 = arith.extui %10 : i1 to i32
    %c0_i32_4 = arith.constant 0 : i32
    %12 = arith.cmpi ne, %11, %c0_i32_4 : i32
    scf.if %12 {
      %c0_7 = arith.constant 0 : index
      %c0_8 = arith.constant 0 : index
      %16 = vector.load %arg7[%c0_7, %c0_8] : memref<256x128xf32, #tpu.memory_space<vmem>>, vector<256x128xf32>
      %17 = arith.addf %16, %6 : vector<256x128xf32>
      %c0_9 = arith.constant 0 : index
      %c0_10 = arith.constant 0 : index
      %18 = vector.load %arg7[%c0_9, %c0_10] : memref<256x128xf32, #tpu.memory_space<vmem>>, vector<256x128xf32>
      tpu.vector_store %arg7[%c0_9, %c0_10], %17 {strides = array<i32>} : memref<256x128xf32, #tpu.memory_space<vmem>>, vector<256x128xf32>,
    } else {
    }
    %c0_i32_5 = arith.constant 0 : i32
    %13 = arith.cmpi eq, %arg2, %c0_i32_5 : i32
    %14 = arith.extui %13 : i1 to i32
    %c0_i32_6 = arith.constant 0 : i32
    %15 = arith.cmpi ne, %14, %c0_i32_6 : i32
    scf.if %15 {
      %c0_7 = arith.constant 0 : index
      %c0_8 = arith.constant 0 : index
      %16 = vector.load %arg7[%c0_7, %c0_8] : memref<256x128xf32, #tpu.memory_space<vmem>>, vector<256x128xf32>
      %c0_9 = arith.constant 0 : index
      %c0_10 = arith.constant 0 : index
      %17 = vector.load %arg5[%c0_9, %c0_10] : memref<256x1xf32, #tpu.memory_space<vmem>>, vector<256x1xf32>
      %18 = vector.broadcast %17 : vector<256x1xf32> to vector<256x128xf32>
      %19 = arith.mulf %16, %18 : vector<256x128xf32>
      %c0_11 = arith.constant 0 : index
      %c0_12 = arith.constant 0 : index
      %20 = vector.load %arg6[%c0_11, %c0_12] : memref<256x128xf32, #tpu.memory_space<vmem>>, vector<256x128xf32>
      tpu.vector_store %arg6[%c0_11, %c0_12], %19 {strides = array<i32>} : memref<256x128xf32, #tpu.memory_space<vmem>>, vector<256x128xf32>,
    } else {
    }
    return
  }
  func.func @transform_0(%arg0: i32, %arg1: i32, %arg2: i32) -> (i32, i32) {
    %c0_i32 = arith.constant 0 : i32
    return %arg0, %arg2 : i32, i32
  }
  func.func @transform_1(%arg0: i32, %arg1: i32, %arg2: i32) -> (i32, i32) {
    %c0_i32 = arith.constant 0 : i32
    %c0_i32_0 = arith.constant 0 : i32
    return %c0_i32, %arg1 : i32, i32
  }
  func.func @transform_2(%arg0: i32, %arg1: i32, %arg2: i32) -> (i32, i32) {
    %c0_i32 = arith.constant 0 : i32
    %c0_i32_0 = arith.constant 0 : i32
    return %arg0, %c0_i32 : i32, i32
  }
  func.func @transform_3(%arg0: i32, %arg1: i32, %arg2: i32) -> (i32, i32) {
    %c0_i32 = arith.constant 0 : i32
    return %arg0, %arg1 : i32, i32
  }
}

</mosaic_0001>

<bundles_post_ra>
// kernel: tpu_custom_call.1
= control target key start
LH: loop header
LB: loop body
LE: loop exit
PB: predicated region body
PF: predicated region fallthrough
CT: control target
= control target key end

     0   :  { %v993_v2 = vmov 0   ;;  %s1257_s0 = inlined_call_operand.vmem [shape: s8[256,256], index: 0, kind: input, shape index: {}]   ;;  %s1258_s1 = inlined_call_operand.vmem [shape: bf16[256,128], index: 1, kind: input, shape index: {}]   ;;  %s1259_s2 = inlined_call_operand.vmem [shape: f32[256,1], index: 2, kind: input, shape index: {}]   ;;  %s1260_s3 = inlined_call_operand.hbm [shape: f32[256,128], index: 3, kind: output, shape index: {}]  }
   0x1   :  { %v953_v0 = vld [vmem:[%s1258_s1 + $0x40] sm:$0xff]   ;;  %952 = vset.pattern.permute.xlu1 %v993_v2  ;;  %951 = vset.pattern.permute.xlu0 %v993_v2  ;;  %v955_v3 = vld [vmem:[%s1258_s1 + $0x48] sm:$0xff]   ;;  %v957_v5 = vld [vmem:[%s1258_s1 + $0x50] sm:$0xff]  }
   0x2   :  { %v954_v1 = vld [vmem:[%s1258_s1] sm:$0xff]   ;;  %819 = vmatprep.subr.bf16.mxu0 %v953_v0  ;;  %931 = vmatprep.subr.bf16.mxu1 %v953_v0  ;;  %v956_v4 = vld [vmem:[%s1258_s1 + $0x8] sm:$0xff]   ;;  %v958_v6 = vld [vmem:[%s1258_s1 + $0x10] sm:$0xff]  }
   0x3   :  { %820 = vmatpush3.bf16.msra.mxu0 %v954_v1  ;;  %939 = vmatpush3.bf16.msra.mxu1 %v954_v1  ;;  %v959_v7 = vld [vmem:[%s1258_s1 + $0x58] sm:$0xff]   ;;  %v961_v9 = vld [vmem:[%s1258_s1 + $0x60] sm:$0xff]   ;;  %v963_v11 = vld [vmem:[%s1258_s1 + $0x68] sm:$0xff]  }
   0x4   :  { %821 = vmatprep.subr.bf16.mxu0 %v955_v3  ;;  %932 = vmatprep.subr.bf16.mxu1 %v955_v3  ;;  %v960_v8 = vld [vmem:[%s1258_s1 + $0x18] sm:$0xff]   ;;  %v962_v10 = vld [vmem:[%s1258_s1 + $0x20] sm:$0xff]   ;;  %v54_v12 = vld [vmem:[%s1257_s0 + $0x8] sm:$0xff] }
   0x5   :  { %v62_v13 = vld [vmem:[%s1257_s0 + $0x48] sm:$0xff]  ;;  %v70_v14 = vunpack.c.l.s8.bf16 %v54_v12  ;;  %v531_v17 = vld [vmem:[%s1259_s2 + $0x10] sm:$0xff]  ;;  %v529_v18 = vld [vmem:[%s1259_s2] sm:$0xff]  ;;  %v72_v31 = vunpack.c.h.s8.bf16 %v54_v12 }
   0x6   :  { %v86_v15 = vunpack.c.l.s8.bf16 %v62_v13  ;;  %v964_v16 = vld [vmem:[%s1258_s1 + $0x28] sm:$0xff]   ;;  %v965_v19 = vld [vmem:[%s1258_s1 + $0x70] sm:$0xff]   ;;  %573 = vperm.xlu1 %952, %v531_v17   ;;  %563 = vperm.xlu0 %951, %v529_v18   ;;  %v532_v21 = vld [vmem:[%s1259_s2 + $0x18] sm:$0xff]  ;;  %v88_v32 = vunpack.c.h.s8.bf16 %v62_v13 }
   0x7   :  { %822 = vmatpush3.bf16.msra.mxu0 %v956_v4  ;;  %940 = vmatpush3.bf16.msra.mxu1 %v956_v4  ;;  %v966_v20 = vld [vmem:[%s1258_s1 + $0x30] sm:$0xff]   ;;  %v530_v22 = vld [vmem:[%s1259_s2 + $0x8] sm:$0xff]  ;;  %v967_v23 = vld [vmem:[%s1258_s1 + $0x78] sm:$0xff]  }
   0x8   :  { %823 = vmatprep.subr.bf16.mxu0 %v957_v5  ;;  %933 = vmatprep.subr.bf16.mxu1 %v957_v5  ;;  %v968_v24 = vld [vmem:[%s1258_s1 + $0x38] sm:$0xff]   ;;  %v53_v25 = vld [vmem:[%s1257_s0] sm:$0xff]  ;;  %v534_v27 = vld [vmem:[%s1259_s2 + $0x28] sm:$0xff] }
   0x9   :  { %229 = vmatprep.mubr.bf16.mxu0 %v70_v14  ;;  %293 = vmatprep.mubr.bf16.mxu1 %v86_v15  ;;  %v61_v26 = vld [vmem:[%s1257_s0 + $0x40] sm:$0xff]  ;;  %v69_v29 = vunpack.c.l.s8.bf16 %v53_v25 }
   0xa   :  { %578 = vperm.xlu1 %952, %v532_v21   ;;  %568 = vperm.xlu0 %951, %v530_v22   ;;  %v533_v28 = vld [vmem:[%s1259_s2 + $0x20] sm:$0xff]  ;;  %v85_v30 = vunpack.c.l.s8.bf16 %v61_v26 }
   0xb   :  { %824 = vmatpush3.bf16.msra.mxu0 %v958_v6  ;;  %941 = vmatpush3.bf16.msra.mxu1 %v958_v6 }
   0xc   :  { %825 = vmatprep.subr.bf16.mxu0 %v959_v7  ;;  %934 = vmatprep.subr.bf16.mxu1 %v959_v7 }
   0xe   :  { %588 = vperm.xlu1 %952, %v534_v27   ;;  %583 = vperm.xlu0 %951, %v533_v28  }
   0xf   :  { %826 = vmatpush3.bf16.msra.mxu0 %v960_v8  ;;  %942 = vmatpush3.bf16.msra.mxu1 %v960_v8 }
  0x10   :  { %827 = vmatprep.subr.bf16.mxu0 %v961_v9  ;;  %935 = vmatprep.subr.bf16.mxu1 %v961_v9 }
  0x13   :  { %828 = vmatpush3.bf16.msra.mxu0 %v962_v10  ;;  %943 = vmatpush3.bf16.msra.mxu1 %v962_v10 }
  0x14   :  { %829 = vmatprep.subr.bf16.mxu0 %v963_v11  ;;  %936 = vmatprep.subr.bf16.mxu1 %v963_v11 }
  0x17   :  { %830 = vmatpush3.bf16.msra.mxu0 %v964_v16  ;;  %944 = vmatpush3.bf16.msra.mxu1 %v964_v16 }
  0x18   :  { %831 = vmatprep.subr.bf16.mxu0 %v965_v19  ;;  %937 = vmatprep.subr.bf16.mxu1 %v965_v19 }
  0x1b   :  { %832 = vmatpush3.bf16.msra.mxu0 %v966_v20  ;;  %945 = vmatpush3.bf16.msra.mxu1 %v966_v20 }
  0x1c   :  { %833 = vmatprep.subr.bf16.mxu0 %v967_v23  ;;  %938 = vmatprep.subr.bf16.mxu1 %v967_v23 }
  0x1f   :  { %834 = vmatpush3.bf16.msra.mxu0 %v968_v24  ;;  %946 = vmatpush3.bf16.msra.mxu1 %v968_v24 }
  0x20   :  { %8 = vsyncpa [#allocation4], 0  ;;  %v536_v33 = vld [vmem:[%s1259_s2 + $0x38] sm:$0xff]  ;;  %v535_v34 = vld [vmem:[%s1259_s2 + $0x30] sm:$0xff]  ;;  %v71_v39 = vunpack.c.h.s8.bf16 %v53_v25  ;;  %v87_v40 = vunpack.c.h.s8.bf16 %v61_v26 }
  0x21   :  { %v56_v35 = vld [vmem:[%s1257_s0 + $0x18] sm:$0xff]  ;;  %598 = vperm.xlu1 %952, %v536_v33   ;;  %593 = vperm.xlu0 %951, %v535_v34   ;;  %v538_v37 = vld [vmem:[%s1259_s2 + $0x48] sm:$0xff]  ;;  %v537_v38 = vld [vmem:[%s1259_s2 + $0x40] sm:$0xff] }
  0x22   :  { %230 = vmatmul.mubr.bf16.vlgmr.msra.gmra.mrb[0].mxu0 %v69_v29  ;;  %294 = vmatmul.mubr.bf16.vlgmr.msra.gmra.mrb[0].mxu1 %v85_v30  ;;  %v64_v36 = vld [vmem:[%s1257_s0 + $0x58] sm:$0xff]  ;;  %v74_v41 = vunpack.c.l.s8.bf16 %v56_v35  ;;  %v539_v44 = vld [vmem:[%s1259_s2 + $0x50] sm:$0xff]  ;;  %v542_v47 = vld [vmem:[%s1259_s2 + $0x68] sm:$0xff]  ;;  %v76_v51 = vunpack.c.h.s8.bf16 %v56_v35 }
  0x23   :  { %237 = vmatprep.mubr.bf16.mxu0 %v72_v31  ;;  %301 = vmatprep.mubr.bf16.mxu1 %v88_v32  ;;  %v90_v42 = vunpack.c.l.s8.bf16 %v64_v36  ;;  %v540_v43 = vld [vmem:[%s1259_s2 + $0x58] sm:$0xff]  ;;  %v55_v45 = vld [vmem:[%s1257_s0 + $0x10] sm:$0xff]  ;;  %v541_v48 = vld [vmem:[%s1259_s2 + $0x60] sm:$0xff]  ;;  %v92_v52 = vunpack.c.h.s8.bf16 %v64_v36 }
  0x24   :  { %v63_v46 = vld [vmem:[%s1257_s0 + $0x50] sm:$0xff]  ;;  %v73_v49 = vunpack.c.l.s8.bf16 %v55_v45  ;;  %v544_v53 = vld [vmem:[%s1259_s2 + $0x78] sm:$0xff]  ;;  %v58_v55 = vld [vmem:[%s1257_s0 + $0x28] sm:$0xff]  ;;  %v75_v59 = vunpack.c.h.s8.bf16 %v55_v45 }
  0x25   :  { %608 = vperm.xlu1 %952, %v538_v37   ;;  %603 = vperm.xlu0 %951, %v537_v38   ;;  %v89_v50 = vunpack.c.l.s8.bf16 %v63_v46  ;;  %v543_v54 = vld [vmem:[%s1259_s2 + $0x70] sm:$0xff]  ;;  %v66_v56 = vld [vmem:[%s1257_s0 + $0x68] sm:$0xff]  ;;  %v545_v58 = vld [vmem:[%s1259_s2 + $0x80] sm:$0xff]  ;;  %v91_v60 = vunpack.c.h.s8.bf16 %v63_v46  ;;  %v78_v61 = vunpack.c.l.s8.bf16 %v58_v55  ;;  %v80_v7 = vunpack.c.h.s8.bf16 %v58_v55 }
  0x26   :  { %v546_v57 = vld [vmem:[%s1259_s2 + $0x88] sm:$0xff]  ;;  %v94_v62 = vunpack.c.l.s8.bf16 %v66_v56  ;;  %v548_v63 = vld [vmem:[%s1259_s2 + $0x98] sm:$0xff]  ;;  %v547_v0 = vld [vmem:[%s1259_s2 + $0x90] sm:$0xff]  ;;  %v96_v8 = vunpack.c.h.s8.bf16 %v66_v56 }
  0x27   :  { %v57_v1 = vld [vmem:[%s1257_s0 + $0x20] sm:$0xff]  ;;  %v550_v3 = vld [vmem:[%s1259_s2 + $0xa8] sm:$0xff]  ;;  %v552_v9 = vld [vmem:[%s1259_s2 + $0xb8] sm:$0xff] }
  0x28   :  { %v65_v2 = vld [vmem:[%s1257_s0 + $0x60] sm:$0xff]  ;;  %v77_v5 = vunpack.c.l.s8.bf16 %v57_v1  ;;  %v551_v10 = vld [vmem:[%s1259_s2 + $0xb0] sm:$0xff]  ;;  %v60_v11 = vld [vmem:[%s1257_s0 + $0x38] sm:$0xff]  ;;  %v79_v15 = vunpack.c.h.s8.bf16 %v57_v1 }
  0x29   :  { %618 = vperm.xlu1 %952, %v540_v43   ;;  %613 = vperm.xlu0 %951, %v539_v44   ;;  %v549_v4 = vld [vmem:[%s1259_s2 + $0xa0] sm:$0xff]  ;;  %v93_v6 = vunpack.c.l.s8.bf16 %v65_v2  ;;  %v68_v12 = vld [vmem:[%s1257_s0 + $0x78] sm:$0xff]  ;;  %v554_v13 = vld [vmem:[%s1259_s2 + $0xc8] sm:$0xff]  ;;  %v95_v16 = vunpack.c.h.s8.bf16 %v65_v2  ;;  %v82_v17 = vunpack.c.l.s8.bf16 %v60_v11  ;;  %v84_v27 = vunpack.c.h.s8.bf16 %v60_v11 }
  0x2a   :  { %238 = vmatmul.mubr.bf16.gmra.mrb[4].mxu0 %v71_v39  ;;  %302 = vmatmul.mubr.bf16.gmra.mrb[4].mxu1 %v87_v40  ;;  %v553_v14 = vld [vmem:[%s1259_s2 + $0xc0] sm:$0xff]  ;;  %v98_v18 = vunpack.c.l.s8.bf16 %v68_v12  ;;  %v556_v19 = vld [vmem:[%s1259_s2 + $0xd8] sm:$0xff]  ;;  %v555_v20 = vld [vmem:[%s1259_s2 + $0xd0] sm:$0xff]  ;;  %v100_v28 = vunpack.c.h.s8.bf16 %v68_v12 }
  0x2b   :  { %245 = vmatprep.mubr.bf16.mxu0 %v74_v41  ;;  %309 = vmatprep.mubr.bf16.mxu1 %v90_v42  ;;  %v59_v21 = vld [vmem:[%s1257_s0 + $0x30] sm:$0xff]  ;;  %v558_v23 = vld [vmem:[%s1259_s2 + $0xe8] sm:$0xff]  ;;  %v557_v24 = vld [vmem:[%s1259_s2 + $0xe0] sm:$0xff] }
  0x2c   :  { %v67_v22 = vld [vmem:[%s1257_s0 + $0x70] sm:$0xff]  ;;  %v81_v25 = vunpack.c.l.s8.bf16 %v59_v21  ;;  %v560_v29 = vld [vmem:[%s1259_s2 + $0xf8] sm:$0xff]  ;;  %v83_v31 = vunpack.c.h.s8.bf16 %v59_v21 }
  0x2d   :  { %628 = vperm.xlu1 %952, %v542_v47   ;;  %623 = vperm.xlu0 %951, %v541_v48   ;;  %v97_v26 = vunpack.c.l.s8.bf16 %v67_v22  ;;  %v559_v30 = vld [vmem:[%s1259_s2 + $0xf0] sm:$0xff]  ;;  %v99_v32 = vunpack.c.h.s8.bf16 %v67_v22  ;;  %s994_s2 = smov [#allocation3]  }
  0x2e   :  { %s790_s28 = sshll.u32 %s994_s2, 4  ;;  %s791_s28 = int_to_ptr.vmem [resolvable:$true] %s790_s28 }
  0x2f   :  { %s969_s29 = scalar_lea.vmem %s791_s28, 4096  ;;  %p974_p1 = scmp.lt.s32.totalorder %s791_s28, %s791_s28 }
  0x30   :  { %p970_p0 = scmp.ne.s32.totalorder %s791_s28, %s969_s29  ;;  %p975_p2 = scmp.lt.s32.totalorder %s969_s29, %s969_s29 }
  0x31   :  { %638 = vperm.xlu1 %952, %v544_v53   ;;  %633 = vperm.xlu0 %951, %v543_v54  }
  0x32   :  { %246 = vmatmul.mubr.bf16.gmra.mrb[8].mxu0 %v73_v49  ;;  %310 = vmatmul.mubr.bf16.gmra.mrb[8].mxu1 %v89_v50  ;;  %p976_p3 = por %p975_p2, %p974_p1 }
  0x33   :  { %253 = vmatprep.mubr.bf16.mxu0 %v76_v51  ;;  %317 = vmatprep.mubr.bf16.mxu1 %v92_v52 }
  0x34   :  { %p977_p4 = pnand %p976_p3, %p970_p0 }
  0x35   :  { %648 = vperm.xlu1 %952, %v546_v57   ;;  %643 = vperm.xlu0 %951, %v545_v58  }
  0x39   :  { %658 = vperm.xlu1 %952, %v548_v63   ;;  %653 = vperm.xlu0 %951, %v547_v0  }
  0x3a   :  { %254 = vmatmul.mubr.bf16.gmra.mrb[12].mxu0 %v75_v59  ;;  %318 = vmatmul.mubr.bf16.gmra.mrb[12].mxu1 %v91_v60 }
  0x3b   :  { %261 = vmatprep.mubr.bf16.mxu0 %v78_v61  ;;  %325 = vmatprep.mubr.bf16.mxu1 %v94_v62 }
  0x3d   :  { %668 = vperm.xlu1 %952, %v550_v3   ;;  %663 = vperm.xlu0 %951, %v549_v4  }
  0x41   :  { %678 = vperm.xlu1 %952, %v552_v9   ;;  %673 = vperm.xlu0 %951, %v551_v10  }
  0x42   :  { %262 = vmatmul.mubr.bf16.gmra.mrb[16].mxu0 %v77_v5  ;;  %326 = vmatmul.mubr.bf16.gmra.mrb[16].mxu1 %v93_v6 }
  0x43   :  { %269 = vmatprep.mubr.bf16.mxu0 %v80_v7  ;;  %333 = vmatprep.mubr.bf16.mxu1 %v96_v8 }
  0x45   :  { %688 = vperm.xlu1 %952, %v554_v13   ;;  %683 = vperm.xlu0 %951, %v553_v14  }
  0x49   :  { %698 = vperm.xlu1 %952, %v556_v19   ;;  %693 = vperm.xlu0 %951, %v555_v20  }
  0x4a   :  { %270 = vmatmul.mubr.bf16.gmra.mrb[20].mxu0 %v79_v15  ;;  %334 = vmatmul.mubr.bf16.gmra.mrb[20].mxu1 %v95_v16 }
  0x4b   :  { %277 = vmatprep.mubr.bf16.mxu0 %v82_v17  ;;  %341 = vmatprep.mubr.bf16.mxu1 %v98_v18 }
  0x4d   :  { %708 = vperm.xlu1 %952, %v558_v23   ;;  %703 = vperm.xlu0 %951, %v557_v24  }
  0x51   :  { %718 = vperm.xlu1 %952, %v560_v29   ;;  %713 = vperm.xlu0 %951, %v559_v30  }
  0x52   :  { %278 = vmatmul.mubr.bf16.gmra.mrb[24].mxu0 %v81_v25  ;;  %342 = vmatmul.mubr.bf16.gmra.mrb[24].mxu1 %v97_v26 }
  0x53   :  { %285 = vmatprep.mubr.bf16.mxu0 %v84_v27  ;;  %349 = vmatprep.mubr.bf16.mxu1 %v100_v28 }
  0x5a   :  { %286 = vmatmul.mubr.bf16.gmra.mrb[28].mxu0 %v83_v31  ;;  %350 = vmatmul.mubr.bf16.gmra.mrb[28].mxu1 %v99_v32 }
  0x85   :  { %v564_v33 = vpop.permute.xlu0 %563  ;;  %v574_v34 = vpop.permute.xlu1 %573 }
  0x89   :  { %v569_v35 = vpop.permute.xlu0 %568  ;;  %v579_v36 = vpop.permute.xlu1 %578 }
  0x8d   :  { %v1209_v37 = vpop.permute.xlu0 %583  ;;  %v1211_v38 = vpop.permute.xlu1 %588 }
  0xa0   :  { %v1213_v39 = vpop.permute.xlu0 %593  ;;  %v1215_v40 = vpop.permute.xlu1 %598 }
  0xa4   :  { %v1217_v41 = vpop.permute.xlu0 %603  ;;  %v1219_v42 = vpop.permute.xlu1 %608 }
  0xa8   :  { %v1221_v43 = vpop.permute.xlu0 %613  ;;  %v1223_v44 = vpop.permute.xlu1 %618 }
  0xac   :  { %v1225_v45 = vpop.permute.xlu0 %623  ;;  %v1227_v46 = vpop.permute.xlu1 %628 }
  0xb0   :  { %v1229_v47 = vpop.permute.xlu0 %633  ;;  %v1231_v48 = vpop.permute.xlu1 %638 }
  0xb4   :  { %v644_v49 = vpop.permute.xlu0 %643  ;;  %v649_v0 = vpop.permute.xlu1 %648 }
  0xb8   :  { %v654_v3 = vpop.permute.xlu0 %653  ;;  %v659_v18 = vpop.permute.xlu1 %658 }
  0xbc   :  { %v664_v21 = vpop.permute.xlu0 %663 }
  0xf5   :  { %v835_v50 = vpop.f32.mrb[0].mxu0  ;;  %v883_v51 = vpop.f32.mrb[0].mxu1 }
  0xf6   :  { %v836_v52 = vpop.f32.mrb[1].mxu0  ;;  %v884_v53 = vpop.f32.mrb[1].mxu1 }
  0xf7   :  { %v837_v54 = vadd.f32 %v836_v52, %v835_v50  ;;  %v885_v55 = vadd.f32 %v884_v53, %v883_v51  ;;  %v838_v56 = vpop.f32.mrb[2].mxu0  ;;  %v886_v57 = vpop.f32.mrb[2].mxu1 }
  0xf8   :  { %v839_v58 = vpop.f32.mrb[3].mxu0  ;;  %v887_v59 = vpop.f32.mrb[3].mxu1 }
  0xf9   :  { %v721_v60 = vmul.f32 %v837_v54, %v564_v33  ;;  %v737_v61 = vmul.f32 %v885_v55, %v644_v49  ;;  %v840_v62 = vadd.f32 %v839_v58, %v838_v56  ;;  %v888_v63 = vadd.f32 %v887_v59, %v886_v57  ;;  %v674_v51 = vpop.permute.xlu0 %673 }
  0xfb   :  { %753 = vst [vmem:[#allocation3] sm:$0xff] %v721_v60  ;;  %769 = vst [vmem:[#allocation3 + $0x80] sm:$0xff] %v737_v61  ;;  %v722_v1 = vmul.f32 %v840_v62, %v569_v35  ;;  %v738_v2 = vmul.f32 %v888_v63, %v649_v0 }
  0xfd   :  { %754 = vst [vmem:[#allocation3 + $0x8] sm:$0xff] %v722_v1  ;;  %770 = vst [vmem:[#allocation3 + $0x88] sm:$0xff] %v738_v2  ;;  %v841_v4 = vpop.f32.mrb[4].mxu0  ;;  %v889_v5 = vpop.f32.mrb[4].mxu1 }
  0xfe   :  { %v842_v6 = vpop.f32.mrb[5].mxu0  ;;  %v890_v7 = vpop.f32.mrb[5].mxu1 }
  0xff   :  { %v843_v8 = vadd.f32 %v842_v6, %v841_v4  ;;  %v891_v9 = vadd.f32 %v890_v7, %v889_v5  ;;  %v844_v10 = vpop.f32.mrb[6].mxu0  ;;  %v892_v11 = vpop.f32.mrb[6].mxu1 }
 0x100   :  { %v845_v12 = vpop.f32.mrb[7].mxu0  ;;  %v893_v13 = vpop.f32.mrb[7].mxu1 }
 0x101   :  { %v723_v14 = vmul.f32 %v843_v8, %v574_v34  ;;  %v739_v15 = vmul.f32 %v891_v9, %v654_v3  ;;  %v846_v16 = vadd.f32 %v845_v12, %v844_v10  ;;  %v894_v17 = vadd.f32 %v893_v13, %v892_v11  ;;  %v684_v3 = vpop.permute.xlu0 %683 }
 0x103   :  { %755 = vst [vmem:[#allocation3 + $0x10] sm:$0xff] %v723_v14  ;;  %771 = vst [vmem:[#allocation3 + $0x90] sm:$0xff] %v739_v15  ;;  %v724_v19 = vmul.f32 %v846_v16, %v579_v36  ;;  %v740_v20 = vmul.f32 %v894_v17, %v659_v18  ;;  %v669_v36 = vpop.permute.xlu1 %668 }
 0x105   :  { %756 = vst [vmem:[#allocation3 + $0x18] sm:$0xff] %v724_v19  ;;  %772 = vst [vmem:[#allocation3 + $0x98] sm:$0xff] %v740_v20  ;;  %v847_v22 = vpop.f32.mrb[8].mxu0  ;;  %v895_v23 = vpop.f32.mrb[8].mxu1 }
 0x106   :  { %v848_v24 = vpop.f32.mrb[9].mxu0  ;;  %v896_v25 = vpop.f32.mrb[9].mxu1 }
 0x107   :  { %v849_v26 = vadd.f32 %v848_v24, %v847_v22  ;;  %v897_v27 = vadd.f32 %v896_v25, %v895_v23  ;;  %v850_v28 = vpop.f32.mrb[10].mxu0  ;;  %v898_v29 = vpop.f32.mrb[10].mxu1 }
 0x108   :  { %v851_v30 = vpop.f32.mrb[11].mxu0  ;;  %v899_v31 = vpop.f32.mrb[11].mxu1 }
 0x109   :  { %v725_v32 = vmul.f32 %v849_v26, %v1209_v37  ;;  %v741_v33 = vmul.f32 %v897_v27, %v664_v21  ;;  %v852_v34 = vadd.f32 %v851_v30, %v850_v28  ;;  %v900_v35 = vadd.f32 %v899_v31, %v898_v29  ;;  %v694_v19 = vpop.permute.xlu0 %693 }
 0x10b   :  { %757 = vst [vmem:[#allocation3 + $0x20] sm:$0xff] %v725_v32  ;;  %773 = vst [vmem:[#allocation3 + $0xa0] sm:$0xff] %v741_v33  ;;  %v726_v49 = vmul.f32 %v852_v34, %v1211_v38  ;;  %v742_v50 = vmul.f32 %v900_v35, %v669_v36  ;;  %v679_v38 = vpop.permute.xlu1 %678 }
 0x10d   :  { %758 = vst [vmem:[#allocation3 + $0x28] sm:$0xff] %v726_v49  ;;  %774 = vst [vmem:[#allocation3 + $0xa8] sm:$0xff] %v742_v50  ;;  %v853_v52 = vpop.f32.mrb[12].mxu0  ;;  %v901_v53 = vpop.f32.mrb[12].mxu1 }
 0x10e   :  { %v854_v54 = vpop.f32.mrb[13].mxu0  ;;  %v902_v55 = vpop.f32.mrb[13].mxu1 }
 0x10f   :  { %v855_v56 = vadd.f32 %v854_v54, %v853_v52  ;;  %v903_v57 = vadd.f32 %v902_v55, %v901_v53  ;;  %v856_v58 = vpop.f32.mrb[14].mxu0  ;;  %v904_v37 = vpop.f32.mrb[14].mxu1 }
 0x110   :  { %v857_v59 = vpop.f32.mrb[15].mxu0  ;;  %v905_v60 = vpop.f32.mrb[15].mxu1 }
 0x111   :  { %v727_v61 = vmul.f32 %v855_v56, %v1213_v39  ;;  %v743_v62 = vmul.f32 %v903_v57, %v674_v51  ;;  %v858_v63 = vadd.f32 %v857_v59, %v856_v58  ;;  %v906_v0 = vadd.f32 %v905_v60, %v904_v37  ;;  %v704_v35 = vpop.permute.xlu0 %703 }
 0x113   :  { %759 = vst [vmem:[#allocation3 + $0x30] sm:$0xff] %v727_v61  ;;  %775 = vst [vmem:[#allocation3 + $0xb0] sm:$0xff] %v743_v62  ;;  %v728_v1 = vmul.f32 %v858_v63, %v1215_v40  ;;  %v744_v2 = vmul.f32 %v906_v0, %v679_v38  ;;  %v689_v40 = vpop.permute.xlu1 %688 }
 0x115   :  { %760 = vst [vmem:[#allocation3 + $0x38] sm:$0xff] %v728_v1  ;;  %776 = vst [vmem:[#allocation3 + $0xb8] sm:$0xff] %v744_v2  ;;  %v859_v4 = vpop.f32.mrb[16].mxu0  ;;  %v907_v5 = vpop.f32.mrb[16].mxu1 }
 0x116   :  { %v860_v6 = vpop.f32.mrb[17].mxu0  ;;  %v908_v7 = vpop.f32.mrb[17].mxu1 }
 0x117   :  { %v861_v8 = vadd.f32 %v860_v6, %v859_v4  ;;  %v909_v9 = vadd.f32 %v908_v7, %v907_v5  ;;  %v862_v10 = vpop.f32.mrb[18].mxu0  ;;  %v910_v39 = vpop.f32.mrb[18].mxu1 }
 0x118   :  { %v863_v11 = vpop.f32.mrb[19].mxu0  ;;  %v911_v12 = vpop.f32.mrb[19].mxu1 }
 0x119   :  { %v729_v13 = vmul.f32 %v861_v8, %v1217_v41  ;;  %v745_v14 = vmul.f32 %v909_v9, %v684_v3  ;;  %v864_v15 = vadd.f32 %v863_v11, %v862_v10  ;;  %v912_v16 = vadd.f32 %v911_v12, %v910_v39  ;;  %v714_v62 = vpop.permute.xlu0 %713 }
 0x11b   :  { %761 = vst [vmem:[#allocation3 + $0x40] sm:$0xff] %v729_v13  ;;  %777 = vst [vmem:[#allocation3 + $0xc0] sm:$0xff] %v745_v14  ;;  %v730_v17 = vmul.f32 %v864_v15, %v1219_v42  ;;  %v746_v18 = vmul.f32 %v912_v16, %v689_v40  ;;  %v699_v42 = vpop.permute.xlu1 %698 }
 0x11d   :  { %762 = vst [vmem:[#allocation3 + $0x48] sm:$0xff] %v730_v17  ;;  %778 = vst [vmem:[#allocation3 + $0xc8] sm:$0xff] %v746_v18  ;;  %v865_v20 = vpop.f32.mrb[20].mxu0  ;;  %v913_v21 = vpop.f32.mrb[20].mxu1 }
 0x11e   :  { %v866_v22 = vpop.f32.mrb[21].mxu0  ;;  %v914_v23 = vpop.f32.mrb[21].mxu1 }
 0x11f   :  { %v867_v24 = vadd.f32 %v866_v22, %v865_v20  ;;  %v915_v25 = vadd.f32 %v914_v23, %v913_v21  ;;  %v868_v26 = vpop.f32.mrb[22].mxu0  ;;  %v916_v41 = vpop.f32.mrb[22].mxu1 }
 0x120   :  { %v869_v27 = vpop.f32.mrb[23].mxu0  ;;  %v917_v28 = vpop.f32.mrb[23].mxu1 }
 0x121   :  { %v731_v29 = vmul.f32 %v867_v24, %v1221_v43  ;;  %v747_v30 = vmul.f32 %v915_v25, %v694_v19  ;;  %v870_v31 = vadd.f32 %v869_v27, %v868_v26  ;;  %v918_v32 = vadd.f32 %v917_v28, %v916_v41 }
 0x123   :  { %763 = vst [vmem:[#allocation3 + $0x50] sm:$0xff] %v731_v29  ;;  %779 = vst [vmem:[#allocation3 + $0xd0] sm:$0xff] %v747_v30  ;;  %v732_v33 = vmul.f32 %v870_v31, %v1223_v44  ;;  %v748_v34 = vmul.f32 %v918_v32, %v699_v42  ;;  %v709_v44 = vpop.permute.xlu1 %708 }
 0x125   :  { %764 = vst [vmem:[#allocation3 + $0x58] sm:$0xff] %v732_v33  ;;  %780 = vst [vmem:[#allocation3 + $0xd8] sm:$0xff] %v748_v34  ;;  %v871_v36 = vpop.f32.mrb[24].mxu0  ;;  %v919_v49 = vpop.f32.mrb[24].mxu1 }
 0x126   :  { %v872_v50 = vpop.f32.mrb[25].mxu0  ;;  %v920_v51 = vpop.f32.mrb[25].mxu1 }
 0x127   :  { %v873_v52 = vadd.f32 %v872_v50, %v871_v36  ;;  %v921_v53 = vadd.f32 %v920_v51, %v919_v49  ;;  %v874_v54 = vpop.f32.mrb[26].mxu0  ;;  %v922_v43 = vpop.f32.mrb[26].mxu1 }
 0x128   :  { %v875_v55 = vpop.f32.mrb[27].mxu0  ;;  %v923_v56 = vpop.f32.mrb[27].mxu1 }
 0x129   :  { %v733_v57 = vmul.f32 %v873_v52, %v1225_v45  ;;  %v749_v58 = vmul.f32 %v921_v53, %v704_v35  ;;  %v876_v37 = vadd.f32 %v875_v55, %v874_v54  ;;  %v924_v59 = vadd.f32 %v923_v56, %v922_v43  ;;  %v719_v10 = vpop.permute.xlu1 %718 }
 0x12b   :  { %765 = vst [vmem:[#allocation3 + $0x60] sm:$0xff] %v733_v57  ;;  %781 = vst [vmem:[#allocation3 + $0xe0] sm:$0xff] %v749_v58  ;;  %v734_v60 = vmul.f32 %v876_v37, %v1227_v46  ;;  %v750_v61 = vmul.f32 %v924_v59, %v709_v44 }
 0x12d   :  { %766 = vst [vmem:[#allocation3 + $0x68] sm:$0xff] %v734_v60  ;;  %782 = vst [vmem:[#allocation3 + $0xe8] sm:$0xff] %v750_v61  ;;  %v877_v63 = vpop.f32.mrb[28].mxu0  ;;  %v925_v0 = vpop.f32.mrb[28].mxu1 }
 0x12e   :  { %v878_v38 = vpop.f32.mrb[29].mxu0  ;;  %v926_v1 = vpop.f32.mrb[29].mxu1 }
 0x12f   :  { %v879_v2 = vadd.f32 %v878_v38, %v877_v63  ;;  %v927_v3 = vadd.f32 %v926_v1, %v925_v0  ;;  %v880_v4 = vpop.f32.mrb[30].mxu0  ;;  %v928_v45 = vpop.f32.mrb[30].mxu1 }
 0x130   :  { %v881_v5 = vpop.f32.mrb[31].mxu0  ;;  %v929_v6 = vpop.f32.mrb[31].mxu1 }
 0x131   :  { %v735_v7 = vmul.f32 %v879_v2, %v1229_v47  ;;  %v751_v8 = vmul.f32 %v927_v3, %v714_v62  ;;  %v882_v46 = vadd.f32 %v881_v5, %v880_v4  ;;  %v930_v9 = vadd.f32 %v929_v6, %v928_v45 }
 0x133   :  { %767 = vst [vmem:[#allocation3 + $0x70] sm:$0xff] %v735_v7  ;;  %783 = vst [vmem:[#allocation3 + $0xf0] sm:$0xff] %v751_v8  ;;  %v736_v39 = vmul.f32 %v882_v46, %v1231_v48  ;;  %v752_v11 = vmul.f32 %v930_v9, %v719_v10 }
 0x135   :  { %768 = vst [vmem:[#allocation3 + $0x78] sm:$0xff] %v736_v39  ;;  %784 = vst [vmem:[#allocation3 + $0xf8] sm:$0xff] %v752_v11 }
 0x136   :  { %980 = shalt.err (!%p977_p4)
}
 0x137   :  { %s981_s5 = scalar_lea.hbm %s1260_s3, 4096 }
 0x138   :  { %p982_p5 = scmp.ne.s32.totalorder %s1260_s3, %s981_s5  ;;  %p985_p6 = scmp.lt.u32.totalorder %s981_s5, %s1260_s3 }
 0x13a   :  { %p987_p7 = pnand %p985_p6, %p982_p5 }
 0x13c   :  { %990 = shalt.err (!%p987_p7)
}
 0x13d   :  { %s995_s1 = smov 128   ;;  %s996_s10 = smov 8  }
 0x13e   :  { %796 = dma.vmem_to_hbm [thread:$0]  %s791_s28, 4096, %s1260_s3, [#allocation4], %s995_s1, %s995_s1, %s996_s10  }
 0x13f   :  { %991 = dma.done.wait [#allocation4], 4096  }
 0x140   :  { %992 = vsyncadd [#allocation4], 4294963200 }
 0x141   :  { %800 = vsyncpa [#allocation4], 1 }

</bundles_post_ra>
